<compile_context>
chip_gen: v5e
topology: v5e:2x2
jax: 0.10.0
libtpu: 0.0.40
codegen_flags: <defaults>
</compile_context>

<pallas_src>
import jax
import jax.numpy as jnp
from jax import lax
from jax.experimental import pallas as pl
from jax.experimental.pallas import tpu as pltpu


def _dynamics_block_kernel(init_ref, ctrl_ref, w_ref, pred_ref, xu_ref):
    """One grid step == TB timesteps of the recurrence for one batch tile.

    init_ref : (TN, D)        initial states for this batch tile
    ctrl_ref : (TB, TN, C)    controls for this time block
    w_ref    : (D+C, D)       fused weight [A^T ; B^T]
    pred_ref : (TB, TN, D)    predictions output block
    xu_ref   : VMEM (TN, D+C) persistent scratch: [state | control] columns,
                              state columns carried across the time grid axis.
    """
    tb_steps = ctrl_ref.shape[0]
    d = init_ref.shape[1]

    # First time-block for this batch tile: seed the carried state columns.
    @pl.when(pl.program_id(1) == 0)
    def _():
        xu_ref[:, :d] = init_ref[...].astype(jnp.float32)

    def step(i, carry):
        # Overwrite only the control columns; state columns persist.
        xu_ref[:, d:] = ctrl_ref[i].astype(jnp.float32)
        # Single fused MXU matmul: [x_t, u_t] @ [A^T ; B^T]
        nxt = jnp.dot(xu_ref[...], w_ref[...], preferred_element_type=jnp.float32)
        xu_ref[:, :d] = nxt
        pred_ref[i] = nxt.astype(pred_ref.dtype)
        return carry

    lax.fori_loop(0, tb_steps, step, 0, unroll=True)


def dynamics_forward_loop(
    initial_states,
    controls,
    a_t,
    b_t,
    scale_tril,
    *,
    tb=32,
    tn=None,
    expand_scale_trils=True,
):
    """Equivalent of DynamicsModel.forward_loop.

    initial_states: (N, D), controls: (T, N, C), a_t: (D, D) == A^T,
    b_t: (C, D) == B^T, scale_tril: (D, D).
    Returns predictions (T, N, D) and scale_trils (T, N, D, D) (constant-noise
    branch: single scale_tril broadcast across T, N -- mirrors torch `.expand`).
    Set expand_scale_trils=False to get the compact (D, D) tril instead of a
    materialized (T, N, D, D) HBM array.
    """
    T, N, C = controls.shape
    D = initial_states.shape[1]
    assert initial_states.shape == (N, D)
    assert T > 0

    # --- tiling ------------------------------------------------------------
    tb = max(1, min(tb, T))
    nb_t = pl.cdiv(T, tb)
    t_pad = nb_t * tb
    if t_pad != T:
        # Pad the time axis with zero controls; padded steps run after the
        # real ones and their outputs are sliced off (recurrence is causal).
        controls_p = jnp.concatenate(
            [controls, jnp.zeros((t_pad - T, N, C), controls.dtype)], axis=0
        )
    else:
        controls_p = controls

    # Batch tile: only sub-tile N when it keeps sublane-friendly shapes.
    if tn is None or tn >= N or N % tn != 0 or tn % 8 != 0:
        tn = N
    nb_n = N // tn

    # Fused weight so each timestep is one MXU dot with a D+C contraction.
    w = jnp.concatenate(
        [a_t.astype(jnp.float32), b_t.astype(jnp.float32)], axis=0
    )  # (D + C, D)

    itemsize = jnp.dtype(initial_states.dtype).itemsize
    cost = pl.CostEstimate(
        flops=2 * t_pad * N * (D + C) * D,
        transcendentals=0,
        bytes_accessed=(
            controls_p.size * jnp.dtype(controls_p.dtype).itemsize
            + initial_states.size * itemsize
            + w.size * 4
            + t_pad * N * D * itemsize
        ),
    )

    predictions = pl.pallas_call(
        _dynamics_block_kernel,
        out_shape=jax.ShapeDtypeStruct((t_pad, N, D), initial_states.dtype),
        grid_spec=pltpu.PrefetchScalarGridSpec(
            num_scalar_prefetch=0,
            grid=(nb_n, nb_t),  # (batch tiles [parallel], time blocks [sequential])
            in_specs=[
                pl.BlockSpec((tn, D), lambda n, t: (n, 0)),          # initial_states
                pl.BlockSpec((tb, tn, C), lambda n, t: (t, n, 0)),   # controls block
                pl.BlockSpec((D + C, D), lambda n, t: (0, 0)),       # fused W (resident)
            ],
            out_specs=pl.BlockSpec((tb, tn, D), lambda n, t: (t, n, 0)),
            scratch_shapes=[pltpu.VMEM((tn, D + C), jnp.float32)],
        ),
        compiler_params=pltpu.CompilerParams(
            dimension_semantics=("parallel", "arbitrary"),
        ),
        cost_estimate=cost,
    )(initial_states, controls_p, w)

    if t_pad != T:
        predictions = predictions[:T]

    if expand_scale_trils:
        # Constant additive noise -> expand across (T, N); analogous to the
        # torch `.expand` view in the constant_noise branch of forward_loop.
        scale_trils = jnp.broadcast_to(scale_tril[None, None, :, :], (T, N, D, D))
    else:
        scale_trils = scale_tril
    return predictions, scale_trils


def dynamics_forward(initial_states, controls, a_t, b_t, scale_tril):
    """Equivalent of DynamicsModel.forward (single timestep): bootstraps
    forward_loop with controls[None, ...] and strips the T axis."""
    preds, trils = dynamics_forward_loop(
        initial_states, controls[None, ...], a_t, b_t, scale_tril
    )
    assert preds.shape[0] == 1 and trils.shape[0] == 1
    return preds[0], trils[0]


# TODO(synk): DynamicsModel.jacobian relies on torch.autograd.grad through an
# arbitrary subclass forward; for this linear instantiation the Jacobian is
# simply A broadcast to (N, D, D), so no Pallas kernel is needed.


def _reference_forward_loop(initial_states, controls, a_t, b_t, scale_tril):
    """Pure-JAX reference (mirrors the PyTorch forward_loop python loop)."""

    def step(state, u):
        nxt = state @ a_t + u @ b_t
        return nxt, nxt

    _, preds = lax.scan(step, initial_states.astype(jnp.float32), controls)
    T, N = controls.shape[:2]
    D = initial_states.shape[1]
    trils = jnp.broadcast_to(scale_tril[None, None, :, :], (T, N, D, D))
    return preds.astype(initial_states.dtype), trils


if __name__ == "__main__":
    # Small shapes consistent with the module's contract.
    T, N, D, C = 8, 2, 8, 4  # seq len, batch, state_dim, control_dim

    key = jax.random.PRNGKey(0)
    k1, k2, k3, k4, k5 = jax.random.split(key, 5)

    # Deterministic synthetic parameters (stable linear system).
    A = 0.9 * jnp.eye(D, dtype=jnp.float32) + 0.01 * jax.random.normal(
        k1, (D, D), jnp.float32
    )
    B = 0.1 * jax.random.normal(k2, (D, C), jnp.float32)
    L_raw = 0.05 * jax.random.normal(k3, (D, D), jnp.float32)
    scale_tril = jnp.tril(L_raw, k=-1) + jnp.diag(0.1 + jnp.abs(jnp.diag(L_raw)))

    a_t = A.T  # (D, D)  so the kernel does x @ A^T
    b_t = B.T  # (C, D)  so the kernel does u @ B^T

    initial_states = jax.random.normal(k4, (N, D), jnp.float32)
    controls = jax.random.normal(k5, (T, N, C), jnp.float32)

    # forward_loop: (T, N, D), (T, N, D, D)
    preds, trils = dynamics_forward_loop(initial_states, controls, a_t, b_t, scale_tril)
    preds = jax.block_until_ready(preds)
    trils = jax.block_until_ready(trils)

    ref_preds, ref_trils = _reference_forward_loop(
        initial_states, controls, a_t, b_t, scale_tril
    )

    assert preds.shape == (T, N, D)
    assert trils.shape == (T, N, D, D)
    assert jnp.allclose(preds, ref_preds, atol=1e-5, rtol=1e-5)
    assert jnp.allclose(trils, ref_trils)

    # forward (single timestep): (N, D), (N, D, D)
    p1, t1 = dynamics_forward(initial_states, controls[0], a_t, b_t, scale_tril)
    p1 = jax.block_until_ready(p1)
    assert p1.shape == (N, D) and t1.shape == (N, D, D)
    assert jnp.allclose(p1, ref_preds[0], atol=1e-5, rtol=1e-5)

    # Exercise the T-padding path (T not a multiple of the time block).
    p3, _ = dynamics_forward_loop(
        initial_states, controls[:3], a_t, b_t, scale_tril, tb=2
    )
    p3 = jax.block_until_ready(p3)
    assert p3.shape == (3, N, D)
    assert jnp.allclose(p3, ref_preds[:3], atol=1e-5, rtol=1e-5)

    print("KERNEL_OK")
</pallas_src>

<mosaic_0001>
module attributes {stable_mosaic.version = 11 : i64} {
  func.func @_dynamics_block_kernel(%arg0: i32, %arg1: i32, %arg2: memref<2x8xf32, #tpu.memory_space<vmem>>, %arg3: memref<8x2x4xf32, #tpu.memory_space<vmem>>, %arg4: memref<12x8xf32, #tpu.memory_space<vmem>>, %arg5: memref<8x2x8xf32, #tpu.memory_space<vmem>>, %arg6: memref<2x12xf32, #tpu.memory_space<vmem>>) attributes {dimension_semantics = [#tpu.dimension_semantics<parallel>, #tpu.dimension_semantics<arbitrary>], iteration_bounds = array<i64: 1, 1>, scalar_prefetch = 0 : i64, scratch_operands = 1 : i64, tpu.core_type = #tpu.core_type<tc>, window_params = [{transform_indices = @transform_0, window_bounds = array<i64: 2, 8>}, {transform_indices = @transform_1, window_bounds = array<i64: 8, 2, 4>}, {pipeline_mode = #tpu.pipeline_mode<synchronous>, transform_indices = @transform_2, window_bounds = array<i64: 12, 8>}, {transform_indices = @transform_3, window_bounds = array<i64: 8, 2, 8>}]} {
    %c0_i32 = arith.constant 0 : i32
    %0 = arith.cmpi eq, %arg1, %c0_i32 : i32
    %1 = arith.extui %0 : i1 to i32
    %c0_i32_0 = arith.constant 0 : i32
    %2 = arith.cmpi ne, %1, %c0_i32_0 : i32
    scf.if %2 {
      %c0_103 = arith.constant 0 : index
      %c0_104 = arith.constant 0 : index
      %99 = vector.load %arg2[%c0_103, %c0_104] : memref<2x8xf32, #tpu.memory_space<vmem>>, vector<2x8xf32>
      %c0_105 = arith.constant 0 : index
      %c0_106 = arith.constant 0 : index
      %100 = vector.load %arg6[%c0_105, %c0_106] : memref<2x12xf32, #tpu.memory_space<vmem>>, vector<2x8xf32>
      tpu.vector_store %arg6[%c0_105, %c0_106], %99 {strides = array<i32>} : memref<2x12xf32, #tpu.memory_space<vmem>>, vector<2x8xf32>,
    } else {
    }
    %c0_i32_1 = arith.constant 0 : i32
    %3 = arith.index_cast %c0_i32_1 : i32 to index
    %c0 = arith.constant 0 : index
    %c0_2 = arith.constant 0 : index
    %4 = vector.load %arg3[%3, %c0, %c0_2] : memref<8x2x4xf32, #tpu.memory_space<vmem>>, vector<1x2x4xf32>
    %5 = vector.shape_cast %4 : vector<1x2x4xf32> to vector<2x4xf32>
    %c0_3 = arith.constant 0 : index
    %c8 = arith.constant 8 : index
    %6 = vector.load %arg6[%c0_3, %c8] : memref<2x12xf32, #tpu.memory_space<vmem>>, vector<2x4xf32>
    tpu.vector_store %arg6[%c0_3, %c8], %5 {strides = array<i32>} : memref<2x12xf32, #tpu.memory_space<vmem>>, vector<2x4xf32>,
    %c0_4 = arith.constant 0 : index
    %c0_5 = arith.constant 0 : index
    %7 = vector.load %arg6[%c0_4, %c0_5] : memref<2x12xf32, #tpu.memory_space<vmem>>, vector<2x12xf32>
    %c0_6 = arith.constant 0 : index
    %c0_7 = arith.constant 0 : index
    %8 = vector.load %arg4[%c0_6, %c0_7] : memref<12x8xf32, #tpu.memory_space<vmem>>, vector<12x8xf32>
    %cst = arith.constant dense<0.000000e+00> : vector<2x8xf32>
    %9 = tpu.matmul %7, %8, %cst {dimension_numbers = #tpu.dot_dimension_numbers<[1], [0], [0], [1], [0, 0, 1, 1], [], []>} : vector<2x12xf32>, vector<12x8xf32>, vector<2x8xf32> -> vector<2x8xf32>
    %c0_8 = arith.constant 0 : index
    %c0_9 = arith.constant 0 : index
    %10 = vector.load %arg6[%c0_8, %c0_9] : memref<2x12xf32, #tpu.memory_space<vmem>>, vector<2x8xf32>
    tpu.vector_store %arg6[%c0_8, %c0_9], %9 {strides = array<i32>} : memref<2x12xf32, #tpu.memory_space<vmem>>, vector<2x8xf32>,
    %11 = arith.index_cast %c0_i32_1 : i32 to index
    %c0_10 = arith.constant 0 : index
    %c0_11 = arith.constant 0 : index
    %12 = vector.load %arg5[%11, %c0_10, %c0_11] : memref<8x2x8xf32, #tpu.memory_space<vmem>>, vector<1x2x8xf32>
    %13 = vector.shape_cast %12 : vector<1x2x8xf32> to vector<2x8xf32>
    %14 = vector.shape_cast %9 : vector<2x8xf32> to vector<1x2x8xf32>
    tpu.vector_store %arg5[%11, %c0_10, %c0_11], %14 {strides = array<i32>} : memref<8x2x8xf32, #tpu.memory_space<vmem>>, vector<1x2x8xf32>,
    %c1_i32 = arith.constant 1 : i32
    %15 = arith.index_cast %c1_i32 : i32 to index
    %c0_12 = arith.constant 0 : index
    %c0_13 = arith.constant 0 : index
    %16 = vector.load %arg3[%15, %c0_12, %c0_13] : memref<8x2x4xf32, #tpu.memory_space<vmem>>, vector<1x2x4xf32>
    %17 = vector.shape_cast %16 : vector<1x2x4xf32> to vector<2x4xf32>
    %c0_14 = arith.constant 0 : index
    %c8_15 = arith.constant 8 : index
    %18 = vector.load %arg6[%c0_14, %c8_15] : memref<2x12xf32, #tpu.memory_space<vmem>>, vector<2x4xf32>
    tpu.vector_store %arg6[%c0_14, %c8_15], %17 {strides = array<i32>} : memref<2x12xf32, #tpu.memory_space<vmem>>, vector<2x4xf32>,
    %c0_16 = arith.constant 0 : index
    %c0_17 = arith.constant 0 : index
    %19 = vector.load %arg6[%c0_16, %c0_17] : memref<2x12xf32, #tpu.memory_space<vmem>>, vector<2x12xf32>
    %c0_18 = arith.constant 0 : index
    %c0_19 = arith.constant 0 : index
    %20 = vector.load %arg4[%c0_18, %c0_19] : memref<12x8xf32, #tpu.memory_space<vmem>>, vector<12x8xf32>
    %cst_20 = arith.constant dense<0.000000e+00> : vector<2x8xf32>
    %21 = tpu.matmul %19, %20, %cst_20 {dimension_numbers = #tpu.dot_dimension_numbers<[1], [0], [0], [1], [0, 0, 1, 1], [], []>} : vector<2x12xf32>, vector<12x8xf32>, vector<2x8xf32> -> vector<2x8xf32>
    %c0_21 = arith.constant 0 : index
    %c0_22 = arith.constant 0 : index
    %22 = vector.load %arg6[%c0_21, %c0_22] : memref<2x12xf32, #tpu.memory_space<vmem>>, vector<2x8xf32>
    tpu.vector_store %arg6[%c0_21, %c0_22], %21 {strides = array<i32>} : memref<2x12xf32, #tpu.memory_space<vmem>>, vector<2x8xf32>,
    %23 = arith.index_cast %c1_i32 : i32 to index
    %c0_23 = arith.constant 0 : index
    %c0_24 = arith.constant 0 : index
    %24 = vector.load %arg5[%23, %c0_23, %c0_24] : memref<8x2x8xf32, #tpu.memory_space<vmem>>, vector<1x2x8xf32>
    %25 = vector.shape_cast %24 : vector<1x2x8xf32> to vector<2x8xf32>
    %26 = vector.shape_cast %21 : vector<2x8xf32> to vector<1x2x8xf32>
    tpu.vector_store %arg5[%23, %c0_23, %c0_24], %26 {strides = array<i32>} : memref<8x2x8xf32, #tpu.memory_space<vmem>>, vector<1x2x8xf32>,
    %c2_i32 = arith.constant 2 : i32
    %27 = arith.index_cast %c2_i32 : i32 to index
    %c0_25 = arith.constant 0 : index
    %c0_26 = arith.constant 0 : index
    %28 = vector.load %arg3[%27, %c0_25, %c0_26] : memref<8x2x4xf32, #tpu.memory_space<vmem>>, vector<1x2x4xf32>
    %29 = vector.shape_cast %28 : vector<1x2x4xf32> to vector<2x4xf32>
    %c0_27 = arith.constant 0 : index
    %c8_28 = arith.constant 8 : index
    %30 = vector.load %arg6[%c0_27, %c8_28] : memref<2x12xf32, #tpu.memory_space<vmem>>, vector<2x4xf32>
    tpu.vector_store %arg6[%c0_27, %c8_28], %29 {strides = array<i32>} : memref<2x12xf32, #tpu.memory_space<vmem>>, vector<2x4xf32>,
    %c0_29 = arith.constant 0 : index
    %c0_30 = arith.constant 0 : index
    %31 = vector.load %arg6[%c0_29, %c0_30] : memref<2x12xf32, #tpu.memory_space<vmem>>, vector<2x12xf32>
    %c0_31 = arith.constant 0 : index
    %c0_32 = arith.constant 0 : index
    %32 = vector.load %arg4[%c0_31, %c0_32] : memref<12x8xf32, #tpu.memory_space<vmem>>, vector<12x8xf32>
    %cst_33 = arith.constant dense<0.000000e+00> : vector<2x8xf32>
    %33 = tpu.matmul %31, %32, %cst_33 {dimension_numbers = #tpu.dot_dimension_numbers<[1], [0], [0], [1], [0, 0, 1, 1], [], []>} : vector<2x12xf32>, vector<12x8xf32>, vector<2x8xf32> -> vector<2x8xf32>
    %c0_34 = arith.constant 0 : index
    %c0_35 = arith.constant 0 : index
    %34 = vector.load %arg6[%c0_34, %c0_35] : memref<2x12xf32, #tpu.memory_space<vmem>>, vector<2x8xf32>
    tpu.vector_store %arg6[%c0_34, %c0_35], %33 {strides = array<i32>} : memref<2x12xf32, #tpu.memory_space<vmem>>, vector<2x8xf32>,
    %35 = arith.index_cast %c2_i32 : i32 to index
    %c0_36 = arith.constant 0 : index
    %c0_37 = arith.constant 0 : index
    %36 = vector.load %arg5[%35, %c0_36, %c0_37] : memref<8x2x8xf32, #tpu.memory_space<vmem>>, vector<1x2x8xf32>
    %37 = vector.shape_cast %36 : vector<1x2x8xf32> to vector<2x8xf32>
    %38 = vector.shape_cast %33 : vector<2x8xf32> to vector<1x2x8xf32>
    tpu.vector_store %arg5[%35, %c0_36, %c0_37], %38 {strides = array<i32>} : memref<8x2x8xf32, #tpu.memory_space<vmem>>, vector<1x2x8xf32>,
    %c3_i32 = arith.constant 3 : i32
    %39 = arith.index_cast %c3_i32 : i32 to index
    %c0_38 = arith.constant 0 : index
    %c0_39 = arith.constant 0 : index
    %40 = vector.load %arg3[%39, %c0_38, %c0_39] : memref<8x2x4xf32, #tpu.memory_space<vmem>>, vector<1x2x4xf32>
    %41 = vector.shape_cast %40 : vector<1x2x4xf32> to vector<2x4xf32>
    %c0_40 = arith.constant 0 : index
    %c8_41 = arith.constant 8 : index
    %42 = vector.load %arg6[%c0_40, %c8_41] : memref<2x12xf32, #tpu.memory_space<vmem>>, vector<2x4xf32>
    tpu.vector_store %arg6[%c0_40, %c8_41], %41 {strides = array<i32>} : memref<2x12xf32, #tpu.memory_space<vmem>>, vector<2x4xf32>,
    %c0_42 = arith.constant 0 : index
    %c0_43 = arith.constant 0 : index
    %43 = vector.load %arg6[%c0_42, %c0_43] : memref<2x12xf32, #tpu.memory_space<vmem>>, vector<2x12xf32>
    %c0_44 = arith.constant 0 : index
    %c0_45 = arith.constant 0 : index
    %44 = vector.load %arg4[%c0_44, %c0_45] : memref<12x8xf32, #tpu.memory_space<vmem>>, vector<12x8xf32>
    %cst_46 = arith.constant dense<0.000000e+00> : vector<2x8xf32>
    %45 = tpu.matmul %43, %44, %cst_46 {dimension_numbers = #tpu.dot_dimension_numbers<[1], [0], [0], [1], [0, 0, 1, 1], [], []>} : vector<2x12xf32>, vector<12x8xf32>, vector<2x8xf32> -> vector<2x8xf32>
    %c0_47 = arith.constant 0 : index
    %c0_48 = arith.constant 0 : index
    %46 = vector.load %arg6[%c0_47, %c0_48] : memref<2x12xf32, #tpu.memory_space<vmem>>, vector<2x8xf32>
    tpu.vector_store %arg6[%c0_47, %c0_48], %45 {strides = array<i32>} : memref<2x12xf32, #tpu.memory_space<vmem>>, vector<2x8xf32>,
    %47 = arith.index_cast %c3_i32 : i32 to index
    %c0_49 = arith.constant 0 : index
    %c0_50 = arith.constant 0 : index
    %48 = vector.load %arg5[%47, %c0_49, %c0_50] : memref<8x2x8xf32, #tpu.memory_space<vmem>>, vector<1x2x8xf32>
    %49 = vector.shape_cast %48 : vector<1x2x8xf32> to vector<2x8xf32>
    %50 = vector.shape_cast %45 : vector<2x8xf32> to vector<1x2x8xf32>
    tpu.vector_store %arg5[%47, %c0_49, %c0_50], %50 {strides = array<i32>} : memref<8x2x8xf32, #tpu.memory_space<vmem>>, vector<1x2x8xf32>,
    %c4_i32 = arith.constant 4 : i32
    %51 = arith.index_cast %c4_i32 : i32 to index
    %c0_51 = arith.constant 0 : index
    %c0_52 = arith.constant 0 : index
    %52 = vector.load %arg3[%51, %c0_51, %c0_52] : memref<8x2x4xf32, #tpu.memory_space<vmem>>, vector<1x2x4xf32>
    %53 = vector.shape_cast %52 : vector<1x2x4xf32> to vector<2x4xf32>
    %c0_53 = arith.constant 0 : index
    %c8_54 = arith.constant 8 : index
    %54 = vector.load %arg6[%c0_53, %c8_54] : memref<2x12xf32, #tpu.memory_space<vmem>>, vector<2x4xf32>
    tpu.vector_store %arg6[%c0_53, %c8_54], %53 {strides = array<i32>} : memref<2x12xf32, #tpu.memory_space<vmem>>, vector<2x4xf32>,
    %c0_55 = arith.constant 0 : index
    %c0_56 = arith.constant 0 : index
    %55 = vector.load %arg6[%c0_55, %c0_56] : memref<2x12xf32, #tpu.memory_space<vmem>>, vector<2x12xf32>
    %c0_57 = arith.constant 0 : index
    %c0_58 = arith.constant 0 : index
    %56 = vector.load %arg4[%c0_57, %c0_58] : memref<12x8xf32, #tpu.memory_space<vmem>>, vector<12x8xf32>
    %cst_59 = arith.constant dense<0.000000e+00> : vector<2x8xf32>
    %57 = tpu.matmul %55, %56, %cst_59 {dimension_numbers = #tpu.dot_dimension_numbers<[1], [0], [0], [1], [0, 0, 1, 1], [], []>} : vector<2x12xf32>, vector<12x8xf32>, vector<2x8xf32> -> vector<2x8xf32>
    %c0_60 = arith.constant 0 : index
    %c0_61 = arith.constant 0 : index
    %58 = vector.load %arg6[%c0_60, %c0_61] : memref<2x12xf32, #tpu.memory_space<vmem>>, vector<2x8xf32>
    tpu.vector_store %arg6[%c0_60, %c0_61], %57 {strides = array<i32>} : memref<2x12xf32, #tpu.memory_space<vmem>>, vector<2x8xf32>,
    %59 = arith.index_cast %c4_i32 : i32 to index
    %c0_62 = arith.constant 0 : index
    %c0_63 = arith.constant 0 : index
    %60 = vector.load %arg5[%59, %c0_62, %c0_63] : memref<8x2x8xf32, #tpu.memory_space<vmem>>, vector<1x2x8xf32>
    %61 = vector.shape_cast %60 : vector<1x2x8xf32> to vector<2x8xf32>
    %62 = vector.shape_cast %57 : vector<2x8xf32> to vector<1x2x8xf32>
    tpu.vector_store %arg5[%59, %c0_62, %c0_63], %62 {strides = array<i32>} : memref<8x2x8xf32, #tpu.memory_space<vmem>>, vector<1x2x8xf32>,
    %c5_i32 = arith.constant 5 : i32
    %63 = arith.index_cast %c5_i32 : i32 to index
    %c0_64 = arith.constant 0 : index
    %c0_65 = arith.constant 0 : index
    %64 = vector.load %arg3[%63, %c0_64, %c0_65] : memref<8x2x4xf32, #tpu.memory_space<vmem>>, vector<1x2x4xf32>
    %65 = vector.shape_cast %64 : vector<1x2x4xf32> to vector<2x4xf32>
    %c0_66 = arith.constant 0 : index
    %c8_67 = arith.constant 8 : index
    %66 = vector.load %arg6[%c0_66, %c8_67] : memref<2x12xf32, #tpu.memory_space<vmem>>, vector<2x4xf32>
    tpu.vector_store %arg6[%c0_66, %c8_67], %65 {strides = array<i32>} : memref<2x12xf32, #tpu.memory_space<vmem>>, vector<2x4xf32>,
    %c0_68 = arith.constant 0 : index
    %c0_69 = arith.constant 0 : index
    %67 = vector.load %arg6[%c0_68, %c0_69] : memref<2x12xf32, #tpu.memory_space<vmem>>, vector<2x12xf32>
    %c0_70 = arith.constant 0 : index
    %c0_71 = arith.constant 0 : index
    %68 = vector.load %arg4[%c0_70, %c0_71] : memref<12x8xf32, #tpu.memory_space<vmem>>, vector<12x8xf32>
    %cst_72 = arith.constant dense<0.000000e+00> : vector<2x8xf32>
    %69 = tpu.matmul %67, %68, %cst_72 {dimension_numbers = #tpu.dot_dimension_numbers<[1], [0], [0], [1], [0, 0, 1, 1], [], []>} : vector<2x12xf32>, vector<12x8xf32>, vector<2x8xf32> -> vector<2x8xf32>
    %c0_73 = arith.constant 0 : index
    %c0_74 = arith.constant 0 : index
    %70 = vector.load %arg6[%c0_73, %c0_74] : memref<2x12xf32, #tpu.memory_space<vmem>>, vector<2x8xf32>
    tpu.vector_store %arg6[%c0_73, %c0_74], %69 {strides = array<i32>} : memref<2x12xf32, #tpu.memory_space<vmem>>, vector<2x8xf32>,
    %71 = arith.index_cast %c5_i32 : i32 to index
    %c0_75 = arith.constant 0 : index
    %c0_76 = arith.constant 0 : index
    %72 = vector.load %arg5[%71, %c0_75, %c0_76] : memref<8x2x8xf32, #tpu.memory_space<vmem>>, vector<1x2x8xf32>
    %73 = vector.shape_cast %72 : vector<1x2x8xf32> to vector<2x8xf32>
    %74 = vector.shape_cast %69 : vector<2x8xf32> to vector<1x2x8xf32>
    tpu.vector_store %arg5[%71, %c0_75, %c0_76], %74 {strides = array<i32>} : memref<8x2x8xf32, #tpu.memory_space<vmem>>, vector<1x2x8xf32>,
    %c6_i32 = arith.constant 6 : i32
    %75 = arith.index_cast %c6_i32 : i32 to index
    %c0_77 = arith.constant 0 : index
    %c0_78 = arith.constant 0 : index
    %76 = vector.load %arg3[%75, %c0_77, %c0_78] : memref<8x2x4xf32, #tpu.memory_space<vmem>>, vector<1x2x4xf32>
    %77 = vector.shape_cast %76 : vector<1x2x4xf32> to vector<2x4xf32>
    %c0_79 = arith.constant 0 : index
    %c8_80 = arith.constant 8 : index
    %78 = vector.load %arg6[%c0_79, %c8_80] : memref<2x12xf32, #tpu.memory_space<vmem>>, vector<2x4xf32>
    tpu.vector_store %arg6[%c0_79, %c8_80], %77 {strides = array<i32>} : memref<2x12xf32, #tpu.memory_space<vmem>>, vector<2x4xf32>,
    %c0_81 = arith.constant 0 : index
    %c0_82 = arith.constant 0 : index
    %79 = vector.load %arg6[%c0_81, %c0_82] : memref<2x12xf32, #tpu.memory_space<vmem>>, vector<2x12xf32>
    %c0_83 = arith.constant 0 : index
    %c0_84 = arith.constant 0 : index
    %80 = vector.load %arg4[%c0_83, %c0_84] : memref<12x8xf32, #tpu.memory_space<vmem>>, vector<12x8xf32>
    %cst_85 = arith.constant dense<0.000000e+00> : vector<2x8xf32>
    %81 = tpu.matmul %79, %80, %cst_85 {dimension_numbers = #tpu.dot_dimension_numbers<[1], [0], [0], [1], [0, 0, 1, 1], [], []>} : vector<2x12xf32>, vector<12x8xf32>, vector<2x8xf32> -> vector<2x8xf32>
    %c0_86 = arith.constant 0 : index
    %c0_87 = arith.constant 0 : index
    %82 = vector.load %arg6[%c0_86, %c0_87] : memref<2x12xf32, #tpu.memory_space<vmem>>, vector<2x8xf32>
    tpu.vector_store %arg6[%c0_86, %c0_87], %81 {strides = array<i32>} : memref<2x12xf32, #tpu.memory_space<vmem>>, vector<2x8xf32>,
    %83 = arith.index_cast %c6_i32 : i32 to index
    %c0_88 = arith.constant 0 : index
    %c0_89 = arith.constant 0 : index
    %84 = vector.load %arg5[%83, %c0_88, %c0_89] : memref<8x2x8xf32, #tpu.memory_space<vmem>>, vector<1x2x8xf32>
    %85 = vector.shape_cast %84 : vector<1x2x8xf32> to vector<2x8xf32>
    %86 = vector.shape_cast %81 : vector<2x8xf32> to vector<1x2x8xf32>
    tpu.vector_store %arg5[%83, %c0_88, %c0_89], %86 {strides = array<i32>} : memref<8x2x8xf32, #tpu.memory_space<vmem>>, vector<1x2x8xf32>,
    %c7_i32 = arith.constant 7 : i32
    %87 = arith.index_cast %c7_i32 : i32 to index
    %c0_90 = arith.constant 0 : index
    %c0_91 = arith.constant 0 : index
    %88 = vector.load %arg3[%87, %c0_90, %c0_91] : memref<8x2x4xf32, #tpu.memory_space<vmem>>, vector<1x2x4xf32>
    %89 = vector.shape_cast %88 : vector<1x2x4xf32> to vector<2x4xf32>
    %c0_92 = arith.constant 0 : index
    %c8_93 = arith.constant 8 : index
    %90 = vector.load %arg6[%c0_92, %c8_93] : memref<2x12xf32, #tpu.memory_space<vmem>>, vector<2x4xf32>
    tpu.vector_store %arg6[%c0_92, %c8_93], %89 {strides = array<i32>} : memref<2x12xf32, #tpu.memory_space<vmem>>, vector<2x4xf32>,
    %c0_94 = arith.constant 0 : index
    %c0_95 = arith.constant 0 : index
    %91 = vector.load %arg6[%c0_94, %c0_95] : memref<2x12xf32, #tpu.memory_space<vmem>>, vector<2x12xf32>
    %c0_96 = arith.constant 0 : index
    %c0_97 = arith.constant 0 : index
    %92 = vector.load %arg4[%c0_96, %c0_97] : memref<12x8xf32, #tpu.memory_space<vmem>>, vector<12x8xf32>
    %cst_98 = arith.constant dense<0.000000e+00> : vector<2x8xf32>
    %93 = tpu.matmul %91, %92, %cst_98 {dimension_numbers = #tpu.dot_dimension_numbers<[1], [0], [0], [1], [0, 0, 1, 1], [], []>} : vector<2x12xf32>, vector<12x8xf32>, vector<2x8xf32> -> vector<2x8xf32>
    %c0_99 = arith.constant 0 : index
    %c0_100 = arith.constant 0 : index
    %94 = vector.load %arg6[%c0_99, %c0_100] : memref<2x12xf32, #tpu.memory_space<vmem>>, vector<2x8xf32>
    tpu.vector_store %arg6[%c0_99, %c0_100], %93 {strides = array<i32>} : memref<2x12xf32, #tpu.memory_space<vmem>>, vector<2x8xf32>,
    %95 = arith.index_cast %c7_i32 : i32 to index
    %c0_101 = arith.constant 0 : index
    %c0_102 = arith.constant 0 : index
    %96 = vector.load %arg5[%95, %c0_101, %c0_102] : memref<8x2x8xf32, #tpu.memory_space<vmem>>, vector<1x2x8xf32>
    %97 = vector.shape_cast %96 : vector<1x2x8xf32> to vector<2x8xf32>
    %98 = vector.shape_cast %93 : vector<2x8xf32> to vector<1x2x8xf32>
    tpu.vector_store %arg5[%95, %c0_101, %c0_102], %98 {strides = array<i32>} : memref<8x2x8xf32, #tpu.memory_space<vmem>>, vector<1x2x8xf32>,
    %c8_i32 = arith.constant 8 : i32
    return
  }
  func.func @transform_0(%arg0: i32, %arg1: i32) -> (i32, i32) {
    %c0_i32 = arith.constant 0 : i32
    %c0_i32_0 = arith.constant 0 : i32
    return %arg0, %c0_i32 : i32, i32
  }
  func.func @transform_1(%arg0: i32, %arg1: i32) -> (i32, i32, i32) {
    %c0_i32 = arith.constant 0 : i32
    %c0_i32_0 = arith.constant 0 : i32
    return %arg1, %arg0, %c0_i32 : i32, i32, i32
  }
  func.func @transform_2(%arg0: i32, %arg1: i32) -> (i32, i32) {
    %c0_i32 = arith.constant 0 : i32
    %c0_i32_0 = arith.constant 0 : i32
    %c0_i32_1 = arith.constant 0 : i32
    return %c0_i32, %c0_i32_0 : i32, i32
  }
  func.func @transform_3(%arg0: i32, %arg1: i32) -> (i32, i32, i32) {
    %c0_i32 = arith.constant 0 : i32
    %c0_i32_0 = arith.constant 0 : i32
    return %arg1, %arg0, %c0_i32 : i32, i32, i32
  }
}

</mosaic_0001>

<bundles_post_ra>
// kernel: tpu_custom_call.1
= control target key start
LH: loop header
LB: loop body
LE: loop exit
PB: predicated region body
PF: predicated region fallthrough
CT: control target
= control target key end

     0   :  { %s547_s0 = inlined_call_operand.vmem [shape: f32[2,8], index: 0, kind: input, shape index: {}]   ;;  %s548_s1 = inlined_call_operand.vmem [shape: f32[8,2,4], index: 1, kind: input, shape index: {}]   ;;  %s549_s2 = inlined_call_operand.vmem [shape: f32[12,8], index: 2, kind: input, shape index: {}]   ;;  %s550_s3 = inlined_call_operand.hbm [shape: f32[8,2,8], index: 3, kind: output, shape index: {}]  }
   0x1   :  { %v22_v0 = vld [vmem:[%s548_s1] sm:$0x3] }
   0x2   :  { %8 = vsyncpa [#allocation4], 0  ;;  %s407_s14 = smov 8   ;;  %v19_v1 = vld [vmem:[%s547_s0] sm:$0x3]  ;;  %vm20_vm0 = vcmask 58368  }
   0x3   :  { %24 = vrot.lane.b32.xlu0 %v22_v0, %s407_s14  ;;  %21 = vst.msk [vmem:[#allocation2] sm:$0x3] %vm20_vm0, %v19_v1  ;;  %v31_v2 = vld [vmem:[%s549_s2 + $0x8] sm:$0xf]  ;;  %vm36_vm1 = vcmask 1043456   ;;  %v446_v3 = vld [vmem:[%s549_s2] sm:$0xff] }
   0x4   :  { %354 = vmatpush.msk.msra.mxu0 %vm36_vm1, %v31_v2  ;;  %v356_v4 = vld [vmem:[%s548_s1 + $0x2] sm:$0x3]  ;;  %vm27_vm2 = vcmask 91200   ;;  %vm32_vm3 = vcmask 97280   ;;  %v72_v7 = vld [vmem:[%s549_s2 + $0x8] sm:$0xf] }
   0x5   :  { %357 = vmatpush.msk.msra.mxu1 %vm36_vm1, %v72_v7  ;;  %v359_v8 = vld [vmem:[%s548_s1 + $0x4] sm:$0x3]  ;;  %v111_v12 = vld [vmem:[%s549_s2 + $0x8] sm:$0xf]  ;;  %v362_v13 = vld [vmem:[%s548_s1 + $0x6] sm:$0x3] }
   0x6   :  { %55 = vmatpush.msra.mxu0 %v446_v3  ;;  %105 = vrot.lane.b32.xlu1 %v359_v8, %s407_s14  ;;  %v150_v17 = vld [vmem:[%s549_s2 + $0x8] sm:$0xf]  ;;  %v371_v28 = vld [vmem:[%s548_s1 + $0xc] sm:$0x3]  ;;  %v374_v33 = vld [vmem:[%s548_s1 + $0xe] sm:$0x3] }
   0x7   :  { %94 = vmatpush.msra.mxu1 %v446_v3  ;;  %360 = vmatpush.msk.msra.mxu2 %vm36_vm1, %v111_v12  ;;  %v365_v18 = vld [vmem:[%s548_s1 + $0x8] sm:$0x3]  ;;  %v368_v23 = vld [vmem:[%s548_s1 + $0xa] sm:$0x3]  ;;  %s408_s1 = smov [#allocation3]   ;;  %s409_s23 = smov 32  }
   0x8   :  { %363 = vmatpush.msk.msra.mxu3 %vm36_vm1, %v150_v17  ;;  %183 = vrot.lane.b32.xlu2 %v365_v18, %s407_s14  ;;  %v189_v22 = vld [vmem:[%s549_s2 + $0x8] sm:$0xf]  ;;  %s410_s24 = smov 2  }
   0x9   :  { %133 = vmatpush.msra.mxu2 %v446_v3  ;;  %366 = vmatpush.msk.msrb.mxu0 %vm36_vm1, %v189_v22  ;;  %v228_v27 = vld [vmem:[%s549_s2 + $0x8] sm:$0xf] }
   0xa   :  { %172 = vmatpush.msra.mxu3 %v446_v3  ;;  %369 = vmatpush.msk.msrb.mxu1 %vm36_vm1, %v228_v27  ;;  %v267_v32 = vld [vmem:[%s549_s2 + $0x8] sm:$0xf] }
   0xb   :  { %66 = vrot.lane.b32.xlu0 %v356_v4, %s407_s14  ;;  %211 = vmatpush.msrb.mxu0 %v446_v3  ;;  %v306_v37 = vld [vmem:[%s549_s2 + $0x8] sm:$0xf]  ;;  %s342_s2 = sshll.u32 %s550_s3, 4  ;;  %s343_s2 = int_to_ptr.hbm [resolvable:$true] %s342_s2 }
   0xc   :  { %250 = vmatpush.msrb.mxu1 %v446_v3  ;;  %372 = vmatpush.msk.msrb.mxu2 %vm36_vm1, %v267_v32 }
   0xd   :  { %375 = vmatpush.msk.msrb.mxu3 %vm36_vm1, %v306_v37 }
   0xe   :  { %144 = vrot.lane.b32.xlu1 %v362_v13, %s407_s14  ;;  %289 = vmatpush.msrb.mxu2 %v446_v3 }
   0xf   :  { %328 = vmatpush.msrb.mxu3 %v446_v3 }
  0x10   :  { %222 = vrot.lane.b32.xlu2 %v368_v23, %s407_s14 }
  0x13   :  { %261 = vrot.lane.b32.xlu0 %v371_v28, %s407_s14 }
  0x16   :  { %300 = vrot.lane.b32.xlu1 %v374_v33, %s407_s14  ;;  %s340_s14 = sshll.u32 %s408_s1, 4  ;;  %s341_s14 = int_to_ptr.vmem [resolvable:$true] %s340_s14 }
  0x62   :  { %v184_v25 = vpop.permute.xlu2 %183 }
  0x6a   :  { %v223_v30 = vpop.permute.xlu2 %222 }
  0x75   :  { %v25_v5 = vpop.permute.xlu0 %24 }
  0x76   :  { %28 = vst.msk [vmem:[#allocation2] sm:$0x3] %vm27_vm2, %v25_v5 }
  0x78   :  { %v106_v15 = vpop.permute.xlu1 %105 }
  0x7d   :  { %v29_v6 = vld [vmem:[#allocation2] sm:$0x3]  ;;  %v67_v10 = vpop.permute.xlu0 %66 }
  0x7e   :  { %355 = vmatmul.msk.f32.vlgmr.msra.gmra.mxu0 %vm32_vm3, %v29_v6 }
  0x80   :  { %v145_v20 = vpop.permute.xlu1 %144 }
  0x85   :  { %v262_v35 = vpop.permute.xlu0 %261 }
  0x88   :  { %v301_v39 = vpop.permute.xlu1 %300 }
  0xfb   :  { %v57_v9 = vpop.f32.mrf.mxu0 }
  0xfc   :  { %61 = vst.msk [vmem:[#allocation2] sm:$0x3] %vm20_vm0, %v57_v9 }
  0xfd   :  { %62 = vst.msk [vmem:[#allocation3] sm:$0x3] %vm20_vm0, %v57_v9 }
  0xfe   :  { %69 = vst.msk [vmem:[#allocation2] sm:$0x3] %vm27_vm2, %v67_v10 }
 0x105   :  { %v70_v11 = vld [vmem:[#allocation2] sm:$0x3] }
 0x106   :  { %358 = vmatmul.msk.f32.vlgmr.msra.gmra.mxu1 %vm32_vm3, %v70_v11 }
 0x183   :  { %v96_v14 = vpop.f32.mrf.mxu1 }
 0x184   :  { %99 = vst.msk [vmem:[#allocation2] sm:$0x3] %vm20_vm0, %v96_v14 }
 0x185   :  { %101 = vst.msk [vmem:[#allocation3 + $0x2] sm:$0x3] %vm20_vm0, %v96_v14 }
 0x186   :  { %108 = vst.msk [vmem:[#allocation2] sm:$0x3] %vm27_vm2, %v106_v15 }
 0x18d   :  { %v109_v16 = vld [vmem:[#allocation2] sm:$0x3] }
 0x18e   :  { %361 = vmatmul.msk.f32.vlgmr.msra.gmra.mxu2 %vm32_vm3, %v109_v16 }
 0x211   :  { %v135_v19 = vpop.f32.mrf.mxu2 }
 0x212   :  { %138 = vst.msk [vmem:[#allocation2] sm:$0x3] %vm20_vm0, %v135_v19 }
 0x213   :  { %140 = vst.msk [vmem:[#allocation3 + $0x4] sm:$0x3] %vm20_vm0, %v135_v19 }
 0x214   :  { %147 = vst.msk [vmem:[#allocation2] sm:$0x3] %vm27_vm2, %v145_v20 }
 0x21b   :  { %v148_v21 = vld [vmem:[#allocation2] sm:$0x3] }
 0x21c   :  { %364 = vmatmul.msk.f32.vlgmr.msra.gmra.mxu3 %vm32_vm3, %v148_v21 }
 0x29f   :  { %v174_v24 = vpop.f32.mrf.mxu3 }
 0x2a0   :  { %177 = vst.msk [vmem:[#allocation2] sm:$0x3] %vm20_vm0, %v174_v24 }
 0x2a1   :  { %179 = vst.msk [vmem:[#allocation3 + $0x6] sm:$0x3] %vm20_vm0, %v174_v24 }
 0x2a2   :  { %186 = vst.msk [vmem:[#allocation2] sm:$0x3] %vm27_vm2, %v184_v25 }
 0x2a9   :  { %v187_v26 = vld [vmem:[#allocation2] sm:$0x3] }
 0x2aa   :  { %367 = vmatmul.msk.f32.vlgmr.msrb.gmra.mxu0 %vm32_vm3, %v187_v26 }
 0x327   :  { %v213_v29 = vpop.f32.mrf.mxu0 }
 0x328   :  { %216 = vst.msk [vmem:[#allocation2] sm:$0x3] %vm20_vm0, %v213_v29 }
 0x329   :  { %218 = vst.msk [vmem:[#allocation3 + $0x8] sm:$0x3] %vm20_vm0, %v213_v29 }
 0x32a   :  { %225 = vst.msk [vmem:[#allocation2] sm:$0x3] %vm27_vm2, %v223_v30 }
 0x331   :  { %v226_v31 = vld [vmem:[#allocation2] sm:$0x3] }
 0x332   :  { %370 = vmatmul.msk.f32.vlgmr.msrb.gmra.mxu1 %vm32_vm3, %v226_v31 }
 0x3af   :  { %v252_v34 = vpop.f32.mrf.mxu1 }
 0x3b0   :  { %255 = vst.msk [vmem:[#allocation2] sm:$0x3] %vm20_vm0, %v252_v34 }
 0x3b1   :  { %257 = vst.msk [vmem:[#allocation3 + $0xa] sm:$0x3] %vm20_vm0, %v252_v34 }
 0x3b2   :  { %264 = vst.msk [vmem:[#allocation2] sm:$0x3] %vm27_vm2, %v262_v35 }
 0x3b9   :  { %v265_v36 = vld [vmem:[#allocation2] sm:$0x3] }
 0x3ba   :  { %373 = vmatmul.msk.f32.vlgmr.msrb.gmra.mxu2 %vm32_vm3, %v265_v36 }
 0x43d   :  { %v291_v38 = vpop.f32.mrf.mxu2 }
 0x43e   :  { %294 = vst.msk [vmem:[#allocation2] sm:$0x3] %vm20_vm0, %v291_v38 }
 0x43f   :  { %296 = vst.msk [vmem:[#allocation3 + $0xc] sm:$0x3] %vm20_vm0, %v291_v38 }
 0x440   :  { %303 = vst.msk [vmem:[#allocation2] sm:$0x3] %vm27_vm2, %v301_v39 }
 0x447   :  { %v304_v40 = vld [vmem:[#allocation2] sm:$0x3] }
 0x448   :  { %376 = vmatmul.msk.f32.vlgmr.msrb.gmra.mxu3 %vm32_vm3, %v304_v40 }
 0x4cb   :  { %v330_v41 = vpop.f32.mrf.mxu3 }
 0x4cc   :  { %333 = vst.msk [vmem:[#allocation2] sm:$0x3] %vm20_vm0, %v330_v41 }
 0x4cd   :  { %335 = vst.msk [vmem:[#allocation3 + $0xe] sm:$0x3] %vm20_vm0, %v330_v41 }
 0x4ce   :  { %348 = dma.vmem_to_hbm [thread:$0]  %s341_s14, 256, %s343_s2, [#allocation4], %s409_s23, %s409_s23, %s410_s24  }
 0x4cf   :  { %405 = dma.done.wait [#allocation4], 256  }
 0x4d0   :  { %406 = vsyncadd [#allocation4], 4294967040 }
 0x4d1   :  { %353 = vsyncpa [#allocation4], 1 }

</bundles_post_ra>
